<compile_context>
chip_gen: v5e
topology: v5e:2x2
jax: 0.10.0
libtpu: 0.0.40
codegen_flags: <defaults>
</compile_context>

<pallas_src>
import functools

import jax
import jax.numpy as jnp
from jax.experimental import pallas as pl
from jax.experimental.pallas import tpu as pltpu


def _upsample_kernel(x_ref, dup_ref, w_ref, shift_ref, o_ref, *, channels, slope):
    """One grid step.

    x_ref    : (1, C, TH, W)   VMEM input slab (NCHW)
    dup_ref  : (W, 4W)         VMEM 0/1 duplication matrix: y @ dup = [yw, yw]
    w_ref    : (C, C)          SMEM conv weights with BN scale folded in
    shift_ref: (C,)            SMEM folded conv-bias + BN shift
    o_ref    : (1, C, TH, 4W)  VMEM; row h = [yw(h), yw(h)]; the wrapper's free
               reshape maps them to output rows 2h and 2h+1 of the x2 result.
    """
    dup = dup_ref[...]                                            # (W, 4W) f32

    # Load each input channel tile once; reuse across all output channels.
    xs = [x_ref[0, ci].astype(jnp.float32) for ci in range(channels)]

    for co in range(channels):
        # 1x1 conv over channels + folded BN scale: unrolled VPU multiply-adds.
        acc = xs[0] * w_ref[co, 0]
        for ci in range(1, channels):
            acc = acc + xs[ci] * w_ref[co, ci]
        acc = acc + shift_ref[co]                                 # bias + BN shift

        # LeakyReLU(negative_slope=slope)
        y = jnp.where(acc > 0, acc, slope * acc)                  # (TH, W)

        # Fused nearest-x2 along W + lane-side H duplication: one tiny MXU matmul.
        # dup[w, r] = 1 iff (r mod 2W)//2 == w, so y @ dup = concat([yw, yw], -1).
        o_ref[0, co] = jnp.dot(
            y, dup, preferred_element_type=jnp.float32).astype(o_ref.dtype)


def _pick_tile_h(H, W, C, itemsize, budget_bytes=2 * 1024 * 1024):
    """Largest H-tile with input-tile bytes <= budget, satisfying the (8,128) rule.

    Live VMEM per double-buffered step ~ 2 * (in + 4*in) = 10 * budget, which stays
    well under the 32 MiB scoped default on v5e/v6e/v7x for budget = 2 MiB.
    """
    per_row = C * W * itemsize
    if H * per_row <= budget_bytes or H <= 8:
        return H                                  # whole image per step
    th = max(8, (budget_bytes // per_row) // 8 * 8)
    th = min(th, H)
    while th >= 8:
        if H % th == 0:
            return th
        th -= 8
    return H  # H has no suitable multiple-of-8 divisor: fall back to full H


def upsample_forward(x, conv_w, conv_b, bn_gamma, bn_beta, bn_mean, bn_var,
                     *, eps=1e-5, slope=0.1):
    """Forward pass of `Upsample`. x: (N, C, H, W); returns (N, C, 2H, 2W)."""
    N, C, H, W = x.shape

    # Fold conv bias + inference BatchNorm into the weights and a per-channel shift:
    #   y[co] = sum_ci (w[co,ci]*scale[co]) * x[ci] + ((b[co]-mean[co])*scale[co] + beta[co])
    scale = bn_gamma / jnp.sqrt(bn_var + eps)                                  # (C,)
    w_eff = (conv_w[:, :, 0, 0] * scale[:, None]).astype(jnp.float32)          # (C, C)
    shift = ((conv_b - bn_mean) * scale + bn_beta).astype(jnp.float32)         # (C,)

    # Static 0/1 duplication matrix (built once in the wrapper, DMA'd once):
    #   dup[w, r] = 1 iff (r mod 2W) // 2 == w   =>   y @ dup = [yw, yw]
    rows = jnp.arange(W)[:, None]
    cols = jnp.arange(4 * W)[None, :]
    dup = (((cols % (2 * W)) // 2) == rows).astype(jnp.float32)                # (W, 4W)

    TH = _pick_tile_h(H, W, C, jnp.dtype(x.dtype).itemsize)
    grid = (N, H // TH)

    kernel = functools.partial(_upsample_kernel, channels=C, slope=slope)

    out = pl.pallas_call(
        kernel,
        out_shape=jax.ShapeDtypeStruct((N, C, H, 4 * W), x.dtype),
        grid=grid,
        in_specs=[
            pl.BlockSpec((1, C, TH, W), lambda n, ht: (n, 0, ht, 0)),          # x slab
            pl.BlockSpec((W, 4 * W), lambda n, ht: (0, 0)),                    # dup matrix
            pl.BlockSpec(memory_space=pltpu.MemorySpace.SMEM),                 # w_eff (scalars)
            pl.BlockSpec(memory_space=pltpu.MemorySpace.SMEM),                 # shift (scalars)
        ],
        out_specs=pl.BlockSpec((1, C, TH, 4 * W), lambda n, ht: (n, 0, ht, 0)),
        compiler_params=pltpu.CompilerParams(
            dimension_semantics=("parallel", "parallel")),
    )(x, dup, w_eff, shift)

    # Contiguous dim-merge: (N, C, H, 4W) -> (N, C, 2H, 2W) is a free (bitcast) reshape.
    return out.reshape(N, C, 2 * H, 2 * W)


def _reference(x, w, b, g, bt, m, v, *, eps=1e-5, slope=0.1):
    """Pure-JAX reference for correctness checking (NCHW)."""
    y = jax.lax.conv_general_dilated(
        x, w, window_strides=(1, 1), padding="VALID",
        dimension_numbers=("NCHW", "OIHW", "NCHW"),
        precision=jax.lax.Precision.HIGHEST)
    y = y + b[None, :, None, None]
    y = (y - m[None, :, None, None]) / jnp.sqrt(v[None, :, None, None] + eps)
    y = y * g[None, :, None, None] + bt[None, :, None, None]
    y = jnp.where(y > 0, y, slope * y)
    y = jnp.repeat(jnp.repeat(y, 2, axis=2), 2, axis=3)
    return y


if __name__ == "__main__":
    key = jax.random.PRNGKey(0)
    k_x, k_w, k_b, k_g, k_bt, k_m, k_v = jax.random.split(key, 7)

    N, C, H, W = 2, 4, 16, 16     # Upsample(in_channels=4, out_channels=8); out_channels unused
    x = jax.random.normal(k_x, (N, C, H, W), dtype=jnp.float32)

    # Deterministic synthetic parameters (shapes match nn.Conv2d(C, C, 1) + nn.BatchNorm2d(C)).
    conv_w = 0.1 * jax.random.normal(k_w, (C, C, 1, 1), dtype=jnp.float32)
    conv_b = 0.1 * jax.random.normal(k_b, (C,), dtype=jnp.float32)
    bn_gamma = 1.0 + 0.1 * jax.random.normal(k_g, (C,), dtype=jnp.float32)
    bn_beta = 0.1 * jax.random.normal(k_bt, (C,), dtype=jnp.float32)
    bn_mean = 0.05 * jax.random.normal(k_m, (C,), dtype=jnp.float32)
    bn_var = 1.0 + 0.1 * jax.random.uniform(k_v, (C,), dtype=jnp.float32)

    fwd = jax.jit(upsample_forward)
    out = fwd(x, conv_w, conv_b, bn_gamma, bn_beta, bn_mean, bn_var)
    out = jax.block_until_ready(out)

    ref = _reference(x, conv_w, conv_b, bn_gamma, bn_beta, bn_mean, bn_var)
    assert out.shape == (N, C, 2 * H, 2 * W), out.shape
    assert jnp.allclose(out, ref, rtol=1e-4, atol=1e-4), "mismatch vs reference"

    print("KERNEL_OK")
</pallas_src>

<mosaic_0001>
module attributes {stable_mosaic.version = 11 : i64} {
  func.func @_upsample_kernel(%arg0: i32, %arg1: i32, %arg2: memref<1x4x16x16xf32, #tpu.memory_space<vmem>>, %arg3: memref<16x64xf32, #tpu.memory_space<vmem>>, %arg4: memref<4x4xf32, #tpu.memory_space<smem>>, %arg5: memref<4xf32, #tpu.memory_space<smem>>, %arg6: memref<1x4x16x64xf32, #tpu.memory_space<vmem>>) attributes {dimension_semantics = [#tpu.dimension_semantics<parallel>, #tpu.dimension_semantics<parallel>], iteration_bounds = array<i64: 2, 1>, scalar_prefetch = 0 : i64, scratch_operands = 0 : i64, tpu.core_type = #tpu.core_type<tc>, window_params = [{transform_indices = @transform_0, window_bounds = array<i64: 1, 4, 16, 16>}, {pipeline_mode = #tpu.pipeline_mode<synchronous>, transform_indices = @transform_1, window_bounds = array<i64: 16, 64>}, {transform_indices = @transform_2, window_bounds = array<i64: 4, 4>}, {transform_indices = @transform_3, window_bounds = array<i64: 4>}, {transform_indices = @transform_4, window_bounds = array<i64: 1, 4, 16, 64>}]} {
    %c0 = arith.constant 0 : index
    %c0_0 = arith.constant 0 : index
    %0 = vector.load %arg3[%c0, %c0_0] : memref<16x64xf32, #tpu.memory_space<vmem>>, vector<16x64xf32>
    %c0_1 = arith.constant 0 : index
    %c0_2 = arith.constant 0 : index
    %c0_3 = arith.constant 0 : index
    %c0_4 = arith.constant 0 : index
    %1 = vector.load %arg2[%c0_1, %c0_2, %c0_3, %c0_4] : memref<1x4x16x16xf32, #tpu.memory_space<vmem>>, vector<1x1x16x16xf32>
    %2 = vector.shape_cast %1 : vector<1x1x16x16xf32> to vector<16x16xf32>
    %c0_5 = arith.constant 0 : index
    %c1 = arith.constant 1 : index
    %c0_6 = arith.constant 0 : index
    %c0_7 = arith.constant 0 : index
    %3 = vector.load %arg2[%c0_5, %c1, %c0_6, %c0_7] : memref<1x4x16x16xf32, #tpu.memory_space<vmem>>, vector<1x1x16x16xf32>
    %4 = vector.shape_cast %3 : vector<1x1x16x16xf32> to vector<16x16xf32>
    %c0_8 = arith.constant 0 : index
    %c2 = arith.constant 2 : index
    %c0_9 = arith.constant 0 : index
    %c0_10 = arith.constant 0 : index
    %5 = vector.load %arg2[%c0_8, %c2, %c0_9, %c0_10] : memref<1x4x16x16xf32, #tpu.memory_space<vmem>>, vector<1x1x16x16xf32>
    %6 = vector.shape_cast %5 : vector<1x1x16x16xf32> to vector<16x16xf32>
    %c0_11 = arith.constant 0 : index
    %c3 = arith.constant 3 : index
    %c0_12 = arith.constant 0 : index
    %c0_13 = arith.constant 0 : index
    %7 = vector.load %arg2[%c0_11, %c3, %c0_12, %c0_13] : memref<1x4x16x16xf32, #tpu.memory_space<vmem>>, vector<1x1x16x16xf32>
    %8 = vector.shape_cast %7 : vector<1x1x16x16xf32> to vector<16x16xf32>
    %c0_14 = arith.constant 0 : index
    %c0_15 = arith.constant 0 : index
    %9 = memref.load %arg4[%c0_14, %c0_15] : memref<4x4xf32, #tpu.memory_space<smem>>
    %10 = vector.broadcast %9 : f32 to vector<16x16xf32>
    %11 = arith.mulf %2, %10 : vector<16x16xf32>
    %c0_16 = arith.constant 0 : index
    %c1_17 = arith.constant 1 : index
    %12 = memref.load %arg4[%c0_16, %c1_17] : memref<4x4xf32, #tpu.memory_space<smem>>
    %13 = vector.broadcast %12 : f32 to vector<16x16xf32>
    %14 = arith.mulf %4, %13 : vector<16x16xf32>
    %15 = arith.addf %11, %14 : vector<16x16xf32>
    %c0_18 = arith.constant 0 : index
    %c2_19 = arith.constant 2 : index
    %16 = memref.load %arg4[%c0_18, %c2_19] : memref<4x4xf32, #tpu.memory_space<smem>>
    %17 = vector.broadcast %16 : f32 to vector<16x16xf32>
    %18 = arith.mulf %6, %17 : vector<16x16xf32>
    %19 = arith.addf %15, %18 : vector<16x16xf32>
    %c0_20 = arith.constant 0 : index
    %c3_21 = arith.constant 3 : index
    %20 = memref.load %arg4[%c0_20, %c3_21] : memref<4x4xf32, #tpu.memory_space<smem>>
    %21 = vector.broadcast %20 : f32 to vector<16x16xf32>
    %22 = arith.mulf %8, %21 : vector<16x16xf32>
    %23 = arith.addf %19, %22 : vector<16x16xf32>
    %c0_22 = arith.constant 0 : index
    %24 = memref.load %arg5[%c0_22] : memref<4xf32, #tpu.memory_space<smem>>
    %25 = vector.broadcast %24 : f32 to vector<16x16xf32>
    %26 = arith.addf %23, %25 : vector<16x16xf32>
    %cst = arith.constant 0.000000e+00 : f32
    %27 = vector.broadcast %cst : f32 to vector<16x16xf32>
    %28 = arith.cmpf ogt, %26, %27 : vector<16x16xf32>
    %cst_23 = arith.constant 1.000000e-01 : f32
    %29 = vector.broadcast %cst_23 : f32 to vector<16x16xf32>
    %30 = arith.mulf %29, %26 : vector<16x16xf32>
    %31 = arith.select %28, %26, %30 : vector<16x16xi1>, vector<16x16xf32>
    %cst_24 = arith.constant dense<0.000000e+00> : vector<16x64xf32>
    %32 = tpu.matmul %31, %0, %cst_24 {dimension_numbers = #tpu.dot_dimension_numbers<[1], [0], [0], [1], [0, 0, 1, 1], [], []>} : vector<16x16xf32>, vector<16x64xf32>, vector<16x64xf32> -> vector<16x64xf32>
    %c0_25 = arith.constant 0 : index
    %c0_26 = arith.constant 0 : index
    %c0_27 = arith.constant 0 : index
    %c0_28 = arith.constant 0 : index
    %33 = vector.load %arg6[%c0_25, %c0_26, %c0_27, %c0_28] : memref<1x4x16x64xf32, #tpu.memory_space<vmem>>, vector<1x1x16x64xf32>
    %34 = vector.shape_cast %33 : vector<1x1x16x64xf32> to vector<16x64xf32>
    %35 = vector.shape_cast %32 : vector<16x64xf32> to vector<1x1x16x64xf32>
    tpu.vector_store %arg6[%c0_25, %c0_26, %c0_27, %c0_28], %35 {strides = array<i32>} : memref<1x4x16x64xf32, #tpu.memory_space<vmem>>, vector<1x1x16x64xf32>,
    %c1_29 = arith.constant 1 : index
    %c0_30 = arith.constant 0 : index
    %36 = memref.load %arg4[%c1_29, %c0_30] : memref<4x4xf32, #tpu.memory_space<smem>>
    %37 = vector.broadcast %36 : f32 to vector<16x16xf32>
    %38 = arith.mulf %2, %37 : vector<16x16xf32>
    %c1_31 = arith.constant 1 : index
    %c1_32 = arith.constant 1 : index
    %39 = memref.load %arg4[%c1_31, %c1_32] : memref<4x4xf32, #tpu.memory_space<smem>>
    %40 = vector.broadcast %39 : f32 to vector<16x16xf32>
    %41 = arith.mulf %4, %40 : vector<16x16xf32>
    %42 = arith.addf %38, %41 : vector<16x16xf32>
    %c1_33 = arith.constant 1 : index
    %c2_34 = arith.constant 2 : index
    %43 = memref.load %arg4[%c1_33, %c2_34] : memref<4x4xf32, #tpu.memory_space<smem>>
    %44 = vector.broadcast %43 : f32 to vector<16x16xf32>
    %45 = arith.mulf %6, %44 : vector<16x16xf32>
    %46 = arith.addf %42, %45 : vector<16x16xf32>
    %c1_35 = arith.constant 1 : index
    %c3_36 = arith.constant 3 : index
    %47 = memref.load %arg4[%c1_35, %c3_36] : memref<4x4xf32, #tpu.memory_space<smem>>
    %48 = vector.broadcast %47 : f32 to vector<16x16xf32>
    %49 = arith.mulf %8, %48 : vector<16x16xf32>
    %50 = arith.addf %46, %49 : vector<16x16xf32>
    %c1_37 = arith.constant 1 : index
    %51 = memref.load %arg5[%c1_37] : memref<4xf32, #tpu.memory_space<smem>>
    %52 = vector.broadcast %51 : f32 to vector<16x16xf32>
    %53 = arith.addf %50, %52 : vector<16x16xf32>
    %cst_38 = arith.constant 0.000000e+00 : f32
    %54 = vector.broadcast %cst_38 : f32 to vector<16x16xf32>
    %55 = arith.cmpf ogt, %53, %54 : vector<16x16xf32>
    %cst_39 = arith.constant 1.000000e-01 : f32
    %56 = vector.broadcast %cst_39 : f32 to vector<16x16xf32>
    %57 = arith.mulf %56, %53 : vector<16x16xf32>
    %58 = arith.select %55, %53, %57 : vector<16x16xi1>, vector<16x16xf32>
    %cst_40 = arith.constant dense<0.000000e+00> : vector<16x64xf32>
    %59 = tpu.matmul %58, %0, %cst_40 {dimension_numbers = #tpu.dot_dimension_numbers<[1], [0], [0], [1], [0, 0, 1, 1], [], []>} : vector<16x16xf32>, vector<16x64xf32>, vector<16x64xf32> -> vector<16x64xf32>
    %c0_41 = arith.constant 0 : index
    %c1_42 = arith.constant 1 : index
    %c0_43 = arith.constant 0 : index
    %c0_44 = arith.constant 0 : index
    %60 = vector.load %arg6[%c0_41, %c1_42, %c0_43, %c0_44] : memref<1x4x16x64xf32, #tpu.memory_space<vmem>>, vector<1x1x16x64xf32>
    %61 = vector.shape_cast %60 : vector<1x1x16x64xf32> to vector<16x64xf32>
    %62 = vector.shape_cast %59 : vector<16x64xf32> to vector<1x1x16x64xf32>
    tpu.vector_store %arg6[%c0_41, %c1_42, %c0_43, %c0_44], %62 {strides = array<i32>} : memref<1x4x16x64xf32, #tpu.memory_space<vmem>>, vector<1x1x16x64xf32>,
    %c2_45 = arith.constant 2 : index
    %c0_46 = arith.constant 0 : index
    %63 = memref.load %arg4[%c2_45, %c0_46] : memref<4x4xf32, #tpu.memory_space<smem>>
    %64 = vector.broadcast %63 : f32 to vector<16x16xf32>
    %65 = arith.mulf %2, %64 : vector<16x16xf32>
    %c2_47 = arith.constant 2 : index
    %c1_48 = arith.constant 1 : index
    %66 = memref.load %arg4[%c2_47, %c1_48] : memref<4x4xf32, #tpu.memory_space<smem>>
    %67 = vector.broadcast %66 : f32 to vector<16x16xf32>
    %68 = arith.mulf %4, %67 : vector<16x16xf32>
    %69 = arith.addf %65, %68 : vector<16x16xf32>
    %c2_49 = arith.constant 2 : index
    %c2_50 = arith.constant 2 : index
    %70 = memref.load %arg4[%c2_49, %c2_50] : memref<4x4xf32, #tpu.memory_space<smem>>
    %71 = vector.broadcast %70 : f32 to vector<16x16xf32>
    %72 = arith.mulf %6, %71 : vector<16x16xf32>
    %73 = arith.addf %69, %72 : vector<16x16xf32>
    %c2_51 = arith.constant 2 : index
    %c3_52 = arith.constant 3 : index
    %74 = memref.load %arg4[%c2_51, %c3_52] : memref<4x4xf32, #tpu.memory_space<smem>>
    %75 = vector.broadcast %74 : f32 to vector<16x16xf32>
    %76 = arith.mulf %8, %75 : vector<16x16xf32>
    %77 = arith.addf %73, %76 : vector<16x16xf32>
    %c2_53 = arith.constant 2 : index
    %78 = memref.load %arg5[%c2_53] : memref<4xf32, #tpu.memory_space<smem>>
    %79 = vector.broadcast %78 : f32 to vector<16x16xf32>
    %80 = arith.addf %77, %79 : vector<16x16xf32>
    %cst_54 = arith.constant 0.000000e+00 : f32
    %81 = vector.broadcast %cst_54 : f32 to vector<16x16xf32>
    %82 = arith.cmpf ogt, %80, %81 : vector<16x16xf32>
    %cst_55 = arith.constant 1.000000e-01 : f32
    %83 = vector.broadcast %cst_55 : f32 to vector<16x16xf32>
    %84 = arith.mulf %83, %80 : vector<16x16xf32>
    %85 = arith.select %82, %80, %84 : vector<16x16xi1>, vector<16x16xf32>
    %cst_56 = arith.constant dense<0.000000e+00> : vector<16x64xf32>
    %86 = tpu.matmul %85, %0, %cst_56 {dimension_numbers = #tpu.dot_dimension_numbers<[1], [0], [0], [1], [0, 0, 1, 1], [], []>} : vector<16x16xf32>, vector<16x64xf32>, vector<16x64xf32> -> vector<16x64xf32>
    %c0_57 = arith.constant 0 : index
    %c2_58 = arith.constant 2 : index
    %c0_59 = arith.constant 0 : index
    %c0_60 = arith.constant 0 : index
    %87 = vector.load %arg6[%c0_57, %c2_58, %c0_59, %c0_60] : memref<1x4x16x64xf32, #tpu.memory_space<vmem>>, vector<1x1x16x64xf32>
    %88 = vector.shape_cast %87 : vector<1x1x16x64xf32> to vector<16x64xf32>
    %89 = vector.shape_cast %86 : vector<16x64xf32> to vector<1x1x16x64xf32>
    tpu.vector_store %arg6[%c0_57, %c2_58, %c0_59, %c0_60], %89 {strides = array<i32>} : memref<1x4x16x64xf32, #tpu.memory_space<vmem>>, vector<1x1x16x64xf32>,
    %c3_61 = arith.constant 3 : index
    %c0_62 = arith.constant 0 : index
    %90 = memref.load %arg4[%c3_61, %c0_62] : memref<4x4xf32, #tpu.memory_space<smem>>
    %91 = vector.broadcast %90 : f32 to vector<16x16xf32>
    %92 = arith.mulf %2, %91 : vector<16x16xf32>
    %c3_63 = arith.constant 3 : index
    %c1_64 = arith.constant 1 : index
    %93 = memref.load %arg4[%c3_63, %c1_64] : memref<4x4xf32, #tpu.memory_space<smem>>
    %94 = vector.broadcast %93 : f32 to vector<16x16xf32>
    %95 = arith.mulf %4, %94 : vector<16x16xf32>
    %96 = arith.addf %92, %95 : vector<16x16xf32>
    %c3_65 = arith.constant 3 : index
    %c2_66 = arith.constant 2 : index
    %97 = memref.load %arg4[%c3_65, %c2_66] : memref<4x4xf32, #tpu.memory_space<smem>>
    %98 = vector.broadcast %97 : f32 to vector<16x16xf32>
    %99 = arith.mulf %6, %98 : vector<16x16xf32>
    %100 = arith.addf %96, %99 : vector<16x16xf32>
    %c3_67 = arith.constant 3 : index
    %c3_68 = arith.constant 3 : index
    %101 = memref.load %arg4[%c3_67, %c3_68] : memref<4x4xf32, #tpu.memory_space<smem>>
    %102 = vector.broadcast %101 : f32 to vector<16x16xf32>
    %103 = arith.mulf %8, %102 : vector<16x16xf32>
    %104 = arith.addf %100, %103 : vector<16x16xf32>
    %c3_69 = arith.constant 3 : index
    %105 = memref.load %arg5[%c3_69] : memref<4xf32, #tpu.memory_space<smem>>
    %106 = vector.broadcast %105 : f32 to vector<16x16xf32>
    %107 = arith.addf %104, %106 : vector<16x16xf32>
    %cst_70 = arith.constant 0.000000e+00 : f32
    %108 = vector.broadcast %cst_70 : f32 to vector<16x16xf32>
    %109 = arith.cmpf ogt, %107, %108 : vector<16x16xf32>
    %cst_71 = arith.constant 1.000000e-01 : f32
    %110 = vector.broadcast %cst_71 : f32 to vector<16x16xf32>
    %111 = arith.mulf %110, %107 : vector<16x16xf32>
    %112 = arith.select %109, %107, %111 : vector<16x16xi1>, vector<16x16xf32>
    %cst_72 = arith.constant dense<0.000000e+00> : vector<16x64xf32>
    %113 = tpu.matmul %112, %0, %cst_72 {dimension_numbers = #tpu.dot_dimension_numbers<[1], [0], [0], [1], [0, 0, 1, 1], [], []>} : vector<16x16xf32>, vector<16x64xf32>, vector<16x64xf32> -> vector<16x64xf32>
    %c0_73 = arith.constant 0 : index
    %c3_74 = arith.constant 3 : index
    %c0_75 = arith.constant 0 : index
    %c0_76 = arith.constant 0 : index
    %114 = vector.load %arg6[%c0_73, %c3_74, %c0_75, %c0_76] : memref<1x4x16x64xf32, #tpu.memory_space<vmem>>, vector<1x1x16x64xf32>
    %115 = vector.shape_cast %114 : vector<1x1x16x64xf32> to vector<16x64xf32>
    %116 = vector.shape_cast %113 : vector<16x64xf32> to vector<1x1x16x64xf32>
    tpu.vector_store %arg6[%c0_73, %c3_74, %c0_75, %c0_76], %116 {strides = array<i32>} : memref<1x4x16x64xf32, #tpu.memory_space<vmem>>, vector<1x1x16x64xf32>,
    return
  }
  func.func @transform_0(%arg0: i32, %arg1: i32) -> (i32, i32, i32, i32) {
    %c0_i32 = arith.constant 0 : i32
    %c0_i32_0 = arith.constant 0 : i32
    %c0_i32_1 = arith.constant 0 : i32
    return %arg0, %c0_i32, %arg1, %c0_i32_0 : i32, i32, i32, i32
  }
  func.func @transform_1(%arg0: i32, %arg1: i32) -> (i32, i32) {
    %c0_i32 = arith.constant 0 : i32
    %c0_i32_0 = arith.constant 0 : i32
    %c0_i32_1 = arith.constant 0 : i32
    return %c0_i32, %c0_i32_0 : i32, i32
  }
  func.func @transform_2(%arg0: i32, %arg1: i32) -> (i32, i32) {
    %c0_i32 = arith.constant 0 : i32
    %c0_i32_0 = arith.constant 0 : i32
    %c0_i32_1 = arith.constant 0 : i32
    return %c0_i32, %c0_i32_0 : i32, i32
  }
  func.func @transform_3(%arg0: i32, %arg1: i32) -> i32 {
    %c0_i32 = arith.constant 0 : i32
    %c0_i32_0 = arith.constant 0 : i32
    return %c0_i32 : i32
  }
  func.func @transform_4(%arg0: i32, %arg1: i32) -> (i32, i32, i32, i32) {
    %c0_i32 = arith.constant 0 : i32
    %c0_i32_0 = arith.constant 0 : i32
    %c0_i32_1 = arith.constant 0 : i32
    return %arg0, %c0_i32, %arg1, %c0_i32_0 : i32, i32, i32, i32
  }
}

</mosaic_0001>

<bundles_post_ra>
// kernel: upsample_forward.1
= control target key start
LH: loop header
LB: loop body
LE: loop exit
PB: predicated region body
PF: predicated region fallthrough
CT: control target
= control target key end

     0   :  { %9 = vsyncpa [#allocation3], 0  ;;  %s1201_s0 = inlined_call_operand.hbm [shape: f32[2,4,16,16], index: 0, kind: input, shape index: {}]   ;;  %s1202_s1 = inlined_call_operand.vmem [shape: f32[16,64], index: 1, kind: input, shape index: {}]   ;;  %s1203_s2 = inlined_call_operand.vmem [shape: f32[4,4], index: 2, kind: input, shape index: {}]   ;;  %s1204_s3 = inlined_call_operand.vmem [shape: f32[4], index: 3, kind: input, shape index: {}]   ;;  %s1205_s4 = inlined_call_operand.vmem [shape: f32[2,4,16,64], index: 4, kind: output, shape index: {}]  }
   0x1   :  { %11 = vsyncpa [#allocation3 + $0x1], 0 }
   0x2   :  { %12 = vsyncpa [#allocation4], 0 }
   0x3   :  { %13 = vsyncpa [#allocation7], 0  ;;  %s946_s15 = smov 0   ;;  %s948_s16 = smov 0  }
   0x4   :  { %s950_s17 = smov 0   ;;  %s952_s18 = smov 0  }
   0x5   :  { %s954_s19 = smov 0   ;;  %s956_s20 = smov 0  }
   0x6 LB: > { %s662_s21 = sadd.s32 4294967295, %s915_s20   ;;  %s40_s22 = sadd.s32 1, %s903_s17  ;;  %s915_s20 = sphi %s956_s20, %s19_s20   ;;  %s911_s19 = sphi %s954_s19, %s1214_s19   ;;  %s907_s18 = sphi %s952_s18, %s1213_s18   ;;  %s903_s17 = sphi %s950_s17, %s1212_s17   ;;  %s899_s16 = sphi %s948_s16, %s1211_s16   ;;  %s895_s15 = sphi %s946_s15, %s1210_s15  }
   0x7   : > { %p47_p0 = scmp.ne.s32.totalorder %s903_s17, %s899_s16  ;;  %p48_p1 = scmp.eq.s32.totalorder %s915_s20, 0 }
   0x8   : > { %p53_p2 = scmp.ne.s32.totalorder %s899_s16, %s895_s15  ;;  %p980_p3 = scmp.eq.s32.totalorder %s662_s21, 0 }
   0x9   : > { %p49_p4 = por %p48_p1, %p47_p0  ;;  %p664_p5 = scmp.ge.s32.totalorder %s915_s20, 1 }
   0xa   : > { %p987_p6 = por %p980_p3, %p53_p2  ;;  %p155_p7 = scmp.lt.s32.totalorder %s915_s20, 3 }
   0xb   : > { %s170_s27 = sshll.u32 %s1203_s2, 4  ;;  %p742_p10 = scmp.lt.s32.totalorder %s915_s20, 2  ;;  %s171_s27 = int_to_ptr.vmem [resolvable:$true] %s170_s27 }
   0xc   : > { %p995_p8 = pnand %p664_p5, %p155_p7  ;;  %s180_s5 = sshll.u32 %s1204_s3, 4  ;;  %s181_s5 = int_to_ptr.vmem [resolvable:$true] %s180_s5 }
   0xd   : > { %p1007_p12 = pnand %p742_p10, %p49_p4  ;;  %s917_s7 = smov [#allocation5]  }
   0xe   : > { %p729_p9 = pneg %p995_p8  ;;  %s918_s8 = smov [#allocation6]  }
   0xf   : > { %s191_s9 = sand.u32 1, %s903_s17   ;;  %s31_s10 = sadd.s32 1, %s911_s19 }
  0x10   : > { %p730_p11 = pnand %p729_p9, %p980_p3  ;;  %p33_p13 = scmp.ge.s32.totalorder %s31_s10, 2 }
  0x11   : > { %s668_s11 = sshll.u32 %s191_s9, 6  ;;  %s717_s12 = sshll.u32 %s911_s19, 6 }
  0x12   : > { %732 = dma.vmem_to_smem (!%p730_p11), %s171_s27, 64, %s917_s7, [#allocation4]  }
  0x13   : > { %735 = dma.vmem_to_smem (!%p730_p11), %s181_s5, 16, %s918_s8, [#allocation7]  }
  0x14   : > { %s1216_s10 = smov (%p33_p13, %s31_s10), 0  ;;  %s202_s15 = scalar_lea.hbm %s1201_s0, %s717_s12 }
  0x15   : > { %s195_s21 = scalar_lea.vmem [#allocation2], %s668_s11  ;;  %s35_s26 = ssub.s32 %s911_s19, %s1216_s10 }
  0x16   : > { %s205_s25 = sshll.u32 %s195_s21, 4  ;;  %s203_s27 = sshll.u32 %s202_s15, 4  ;;  %s204_s27 = int_to_ptr.hbm [resolvable:$true] %s203_s27  ;;  %s206_s25 = int_to_ptr.vmem [resolvable:$true] %s205_s25 }
  0x17   : > { %p38_p0 = scmp.eq.s32.totalorder %s35_s26, 0  ;;  %s192_s30 = scalar_lea.sflag [#allocation3], %s191_s9 }
  0x18   : > { %s919_s5 = smov 128   ;;  %s920_s7 = smov 8  }
  0x19   : > { %s1024_s29 = scalar_select %p38_p0, %s903_s17, %s40_s22  }
  0x1a   : > { %739 = dma.hbm_to_vmem [thread:$0]  (!%p1007_p12), %s204_s27, 1024, %s206_s25, %s192_s30, %s919_s5, %s919_s5, %s920_s7  }
  0x1b   : > { %217 = sbr.rel (%p995_p8) target bundleno = 210 (0xd2), region = 36  ;;  %s219_s8 = sand.u32 (!%p995_p8), 1, %s899_s16  }
  0x1c   : > { %s672_s11 = sshll.u32 (!%p995_p8), %s219_s8, 6  ;;  %s220_s12 = scalar_lea.sflag (!%p995_p8), [#allocation3], %s219_s8 }
  0x1d   : > { %s1031_s13 = scalar_lea.vmem (!%p995_p8), [#allocation2], %s672_s11 }
  0x20   : > { %882 = dma.done.wait (%p987_p6), %s220_s12, 1024  }
  0x21   : > { %884 = vsyncadd (%p987_p6), %s220_s12, 4294966272 }
  0x22   : > { %886 = dma.done.wait (%p980_p3), [#allocation4], 64  }
  0x23   : > { %888 = vsyncadd (%p980_p3), [#allocation4], 4294967232 }
  0x24   : > { %890 = dma.done.wait (%p980_p3), [#allocation7], 16  }
  0x25   : > { %892 = vsyncadd (%p980_p3), [#allocation7], 4294967280 }
  0x26   : > { %239 = sfence }
  0x27   : > { %v276_v0 = vld [vmem:[%s1202_s1 + $0x8] sm:$0xff]  ;;  %v275_v1 = vld [vmem:[%s1202_s1] sm:$0xff]  ;;  %s697_s9 = sld [smem:[#allocation5 + $0x100]]  ;;  %v1064_v4 = vld [vmem:[%s1031_s13 + $0x10] sm:$0xff]  ;;  %vm320_vm0 = vcmask 130048   ;;  %p266_p1 = scmp.lt.s32.totalorder %s907_s18, 1 }
  0x28   : > { %469 = vmatpush.msra.mxu2 %v276_v0  ;;  %533 = vmatpush.msra.mxu3 %v276_v0  ;;  %s698_s14 = sld [smem:[#allocation5 + $0x101]]  ;;  %v1056_v2 = vld [vmem:[%s1031_s13] sm:$0xff]  ;;  %v1061_v3 = vld [vmem:[%s1031_s13 + $0x8] sm:$0xff]  ;;  %v1069_v5 = vld [vmem:[%s1031_s13 + $0x18] sm:$0xff]  ;;  %vm350_vm9 = vcmask 523264  }
  0x29   : > { %s1051_s23 = sld [smem:[#allocation5 + $0x102]]  ;;  %341 = vmatpush.msra.mxu0 %v276_v0  ;;  %405 = vmatpush.msra.mxu1 %v276_v0  ;;  %v1072_v6 = vld [vmem:[%s1031_s13 + $0x20] sm:$0xff]  ;;  %v1077_v8 = vld [vmem:[%s1031_s13 + $0x28] sm:$0xff]  ;;  %v1080_v9 = vld [vmem:[%s1031_s13 + $0x30] sm:$0xff]  ;;  %s1218_s18 = smov (!%p266_p1, %s907_s18), 1 }
  0x2a   : > { %470 = vmatpush.msra.mxu2 %v275_v1  ;;  %534 = vmatpush.msra.mxu3 %v275_v1  ;;  %s1053_s15 = sld [smem:[#allocation5 + $0x103]]  ;;  %v1091_v15 = vld [vmem:[%s1031_s13 + $0x38] sm:$0xff] }
  0x2b   : > { %s1058_s21 = sld [smem:[#allocation6 + $0x2]]  ;;  %342 = vmatpush.msra.mxu0 %v275_v1  ;;  %406 = vmatpush.msra.mxu1 %v275_v1 }
  0x2c   : > { %s1066_s25 = sld [smem:[#allocation5 + $0x180]] }
  0x2d   : > { %v418_v7 = vstv %s697_s9  ;;  %s1074_s26 = sld [smem:[#allocation5 + $0x181]] }
  0x2e   : > { %v419_v10 = vmul.f32 %v418_v7, %v1056_v2  ;;  %v422_v11 = vstv %s698_s14  ;;  %s1083_s27 = sld [smem:[#allocation5 + $0x182]]  ;;  %v420_v12 = vmul.f32 %v418_v7, %v1061_v3  ;;  %s718_s14 = sshll.u32 %s1218_s18, 6 }
  0x2f   : > { %v423_v13 = vmul.f32 %v1064_v4, %v422_v11  ;;  %v428_v14 = vstv %s1051_s23  ;;  %s1088_s30 = sld [smem:[#allocation5 + $0x183]]  ;;  %v424_v16 = vmul.f32 %v1069_v5, %v422_v11 }
  0x30   : > { %v429_v17 = vmul.f32 %v1072_v6, %v428_v14  ;;  %v434_v18 = vstv %s1053_s15  ;;  %s1096_s5 = sld [smem:[#allocation6 + $0x3]]  ;;  %v430_v19 = vmul.f32 %v1077_v8, %v428_v14 }
  0x31   : > { %v425_v20 = vadd.f32 %v423_v13, %v419_v10  ;;  %v435_v21 = vmul.f32 %v1080_v9, %v434_v18  ;;  %s1100_s7 = sld [smem:[#allocation5]]  ;;  %v426_v22 = vadd.f32 %v424_v16, %v420_v12  ;;  %v440_v23 = vstv %s1058_s21  ;;  %s273_s21 = scalar_lea.vmem %s1205_s4, %s718_s14 }
  0x32   : > { %v482_v24 = vstv %s1066_s25  ;;  %s1104_s8 = sld [smem:[#allocation5 + $0x1]]  ;;  %v436_v25 = vmul.f32 %v1091_v15, %v434_v18 }
  0x33   : > { %v431_v26 = vadd.f32 %v429_v17, %v425_v20  ;;  %v483_v27 = vmul.f32 %v482_v24, %v1056_v2  ;;  %v486_v28 = vstv %s1074_s26  ;;  %s1109_s11 = sld [smem:[#allocation5 + $0x2]]  ;;  %v432_v29 = vadd.f32 %v430_v19, %v426_v22 }
  0x34   : > { %v487_v30 = vmul.f32 %v1064_v4, %v486_v28  ;;  %v492_v31 = vstv %s1083_s27  ;;  %s1113_s12 = sld [smem:[#allocation5 + $0x3]]  ;;  %v484_v32 = vmul.f32 %v482_v24, %v1061_v3  ;;  %v488_v33 = vmul.f32 %v1069_v5, %v486_v28 }
  0x35   : > { %v437_v34 = vadd.f32 %v435_v21, %v431_v26  ;;  %v493_v35 = vmul.f32 %v1072_v6, %v492_v31  ;;  %v498_v36 = vstv %s1088_s30  ;;  %s1119_s13 = sld [smem:[#allocation6]]  ;;  %v438_v37 = vadd.f32 %v436_v25, %v432_v29 }
  0x36   : > { %v489_v38 = vadd.f32 %v487_v30, %v483_v27  ;;  %v499_v39 = vmul.f32 %v1080_v9, %v498_v36  ;;  %v504_v40 = vstv %s1096_s5  ;;  %s1123_s22 = sld [smem:[#allocation5 + $0x80]]  ;;  %v490_v41 = vadd.f32 %v488_v33, %v484_v32 }
  0x37   : > { %v441_v42 = vadd.f32 %v440_v23, %v437_v34  ;;  %v289_v43 = vstv %s1100_s7  ;;  %s1126_s28 = sld [smem:[#allocation5 + $0x81]]  ;;  %v442_v44 = vadd.f32 %v440_v23, %v438_v37  ;;  %v494_v45 = vmul.f32 %v1077_v8, %v492_v31 }
  0x38   : > { %v495_v46 = vadd.f32 %v493_v35, %v489_v38  ;;  %v290_v47 = vmul.f32 %v289_v43, %v1056_v2  ;;  %v293_v48 = vstv %s1104_s8  ;;  %s1131_s24 = sld [smem:[#allocation5 + $0x82]]  ;;  %v500_v49 = vmul.f32 %v1091_v15, %v498_v36 }
  0x39   : > { %vm443_vm1 = vcmp.gt.f32.partialorder %v441_v42, 0.0  ;;  %v445_v50 = vmul.f32 0.1, %v441_v42  ;;  %v294_v51 = vmul.f32 %v1064_v4, %v293_v48  ;;  %v299_v52 = vstv %s1109_s11  ;;  %s1136_s6 = sld [smem:[#allocation5 + $0x83]] }
  0x3a   : > { %v501_v53 = vadd.f32 %v499_v39, %v495_v46  ;;  %v300_v54 = vmul.f32 %v1072_v6, %v299_v52  ;;  %v305_v55 = vstv %s1113_s12  ;;  %s1140_s9 = sld [smem:[#allocation6 + $0x1]]  ;;  %vm444_vm2 = vcmp.gt.f32.partialorder %v442_v44, 0.0 }
  0x3b   : > { %v447_v56 = vsel %vm443_vm1, %v441_v42, %v445_v50  ;;  %v296_v57 = vadd.f32 %v294_v51, %v290_v47  ;;  %v306_v58 = vmul.f32 %v1080_v9, %v305_v55  ;;  %v311_v59 = vstv %s1119_s13 }
  0x3c   : > { %702 = vmatmul.msk.f32.vlgmr.msra.gmra.mxu2 %vm320_vm0, %v447_v56  ;;  %v505_v60 = vadd.f32 %v504_v40, %v501_v53  ;;  %v354_v61 = vstv %s1123_s22  ;;  %v446_v62 = vmul.f32 0.1, %v442_v44  ;;  %v496_v63 = vadd.f32 %v494_v45, %v490_v41 }
  0x3d   : > { %v302_v0 = vadd.f32 %v300_v54, %v296_v57  ;;  %v355_v1 = vmul.f32 %v354_v61, %v1056_v2  ;;  %v358_v7 = vstv %s1126_s28  ;;  %v291_v10 = vmul.f32 %v289_v43, %v1061_v3 }
  0x3e   : > { %vm507_vm3 = vcmp.gt.f32.partialorder %v505_v60, 0.0  ;;  %v509_v11 = vmul.f32 0.1, %v505_v60  ;;  %v359_v12 = vmul.f32 %v1064_v4, %v358_v7  ;;  %v364_v13 = vstv %s1131_s24 }
  0x3f   : > { %v308_v14 = vadd.f32 %v306_v58, %v302_v0  ;;  %v365_v16 = vmul.f32 %v1072_v6, %v364_v13  ;;  %v370_v17 = vstv %s1136_s6  ;;  %v448_v18 = vsel %vm444_vm2, %v442_v44, %v446_v62 }
  0x40   : > { %v511_v19 = vsel %vm507_vm3, %v505_v60, %v509_v11  ;;  %v361_v20 = vadd.f32 %v359_v12, %v355_v1  ;;  %v371_v21 = vmul.f32 %v1080_v9, %v370_v17  ;;  %v376_v22 = vstv %s1140_s9 }
  0x41   : > { %711 = vmatmul.msk.f32.vlgmr.msra.gmra.mxu3 %vm320_vm0, %v511_v19  ;;  %v312_v2 = vadd.f32 %v311_v59, %v308_v14  ;;  %v502_v23 = vadd.f32 %v500_v49, %v496_v63  ;;  %v295_v24 = vmul.f32 %v1069_v5, %v293_v48  ;;  %v301_v4 = vmul.f32 %v1077_v8, %v299_v52 }
  0x42   : > { %v367_v25 = vadd.f32 %v365_v16, %v361_v20  ;;  %v307_v26 = vmul.f32 %v1091_v15, %v305_v55  ;;  %v356_v6 = vmul.f32 %v354_v61, %v1061_v3  ;;  %v360_v27 = vmul.f32 %v1069_v5, %v358_v7 }
  0x43   : > { %vm314_vm4 = vcmp.gt.f32.partialorder %v312_v2, 0.0  ;;  %v316_v28 = vmul.f32 0.1, %v312_v2  ;;  %v506_v29 = vadd.f32 %v504_v40, %v502_v23  ;;  %v297_v9 = vadd.f32 %v295_v24, %v291_v10 }
  0x44   : > { %v373_v30 = vadd.f32 %v371_v21, %v367_v25  ;;  %703 = vmatmul.msk.f32.gmra.mxu2 %vm320_vm0, %v448_v18  ;;  %v362_v31 = vadd.f32 %v360_v27, %v356_v6  ;;  %v366_v32 = vmul.f32 %v1077_v8, %v364_v13  ;;  %v372_v33 = vmul.f32 %v1091_v15, %v370_v17 }
  0x45   : > { %v318_v34 = vsel %vm314_vm4, %v312_v2, %v316_v28  ;;  %vm508_vm5 = vcmp.gt.f32.partialorder %v506_v29, 0.0  ;;  %v510_v35 = vmul.f32 0.1, %v506_v29  ;;  %v303_v36 = vadd.f32 %v301_v4, %v297_v9 }
  0x46   : > { %686 = vmatmul.msk.f32.vlgmr.msra.gmra.mxu0 %vm320_vm0, %v318_v34  ;;  %v377_v3 = vadd.f32 %v376_v22, %v373_v30  ;;  %v368_v5 = vadd.f32 %v366_v32, %v362_v31 }
  0x47   : > { %v512_v37 = vsel %vm508_vm5, %v506_v29, %v510_v35  ;;  %v309_v38 = vadd.f32 %v307_v26, %v303_v36 }
  0x48   : > { %vm379_vm6 = vcmp.gt.f32.partialorder %v377_v3, 0.0  ;;  %v381_v39 = vmul.f32 0.1, %v377_v3  ;;  %v374_v40 = vadd.f32 %v372_v33, %v368_v5 }
  0x49   : > { %712 = vmatmul.msk.f32.gmra.mxu3 %vm320_vm0, %v512_v37  ;;  %v313_v8 = vadd.f32 %v311_v59, %v309_v38 }
  0x4a   : > { %v383_v41 = vsel %vm379_vm6, %v377_v3, %v381_v39  ;;  %v378_v15 = vadd.f32 %v376_v22, %v374_v40 }
  0x4b   : > { %693 = vmatmul.msk.f32.vlgmr.msra.gmra.mxu1 %vm320_vm0, %v383_v41  ;;  %vm315_vm7 = vcmp.gt.f32.partialorder %v313_v8, 0.0  ;;  %v317_v42 = vmul.f32 0.1, %v313_v8 }
  0x4c   : > { %v382_v43 = vmul.f32 0.1, %v378_v15  ;;  %vm380_vm8 = vcmp.gt.f32.partialorder %v378_v15, 0.0 }
  0x4d   : > { %v319_v44 = vsel %vm315_vm7, %v313_v8, %v317_v42 }
  0x4e   : > { %687 = vmatmul.msk.f32.gmra.mxu0 %vm320_vm0, %v319_v44  ;;  %v384_v45 = vsel %vm380_vm8, %v378_v15, %v382_v43 }
  0x53   : > { %694 = vmatmul.msk.f32.gmra.mxu1 %vm320_vm0, %v384_v45 }
  0xbf   : > { %v472_v46 = vpop.f32.mrf.mxu2 }
  0xc0   : > { %704 = vst.msk [vmem:[%s273_s21 + $0x20] sm:$0xff] %vm350_vm9, %v472_v46 }
  0xc3   : > { %v344_v47 = vpop.f32.mrf.mxu0 }
  0xc4   : > { %351 = vst.msk [vmem:[%s273_s21] sm:$0xff] %vm350_vm9, %v344_v47  ;;  %v536_v48 = vpop.f32.mrf.mxu3 }
  0xc5   : > { %713 = vst.msk [vmem:[%s273_s21 + $0x30] sm:$0xff] %vm350_vm9, %v536_v48 }
  0xc7   : > { %v475_v49 = vpop.f32.mrf.mxu2 }
  0xc8   : > { %v408_v50 = vpop.f32.mrf.mxu1  ;;  %705 = vst.msk [vmem:[%s273_s21 + $0x28] sm:$0xff] %vm350_vm9, %v475_v49 }
  0xc9   : > { %695 = vst.msk [vmem:[%s273_s21 + $0x10] sm:$0xff] %vm350_vm9, %v408_v50 }
  0xcb   : > { %v347_v51 = vpop.f32.mrf.mxu0 }
  0xcc   : > { %352 = vst.msk [vmem:[%s273_s21 + $0x8] sm:$0xff] %vm350_vm9, %v347_v51  ;;  %v539_v52 = vpop.f32.mrf.mxu3 }
  0xcd   : > { %714 = vst.msk [vmem:[%s273_s21 + $0x38] sm:$0xff] %vm350_vm9, %v539_v52 }
  0xd0   : > { %v411_v53 = vpop.f32.mrf.mxu1 }
  0xd1   : > { %696 = vst.msk [vmem:[%s273_s21 + $0x18] sm:$0xff] %vm350_vm9, %v411_v53 }
  0xd2 PF: > { %s19_s20 = sadd.s32 1, %s915_s20   ;;  %s1210_s15 = smov %s899_s16 }
  0xd3   : > { %p16_p2 = scmp.ge.s32.totalorder %s19_s20, 4   ;;  %s1211_s16 = smov %s903_s17 }
  0xd4   : > { %s1212_s17 = smov %s1024_s29  ;;  %s1213_s18 = smov %s911_s19 }
  0xd5   : > { %s1214_s19 = smov %s1216_s10  ;;  %18 = sbr.rel (!%p16_p2) target bundleno = 6 (0x6), region = 91 }
  0xda   :  { %575 = vsyncpa [#allocation3], 1 }
  0xdb   :  { %577 = vsyncpa [#allocation3 + $0x1], 1 }
  0xdc   :  { %578 = vsyncpa [#allocation4], 1 }
  0xdd   :  { %580 = vsyncpa [#allocation4 + $0x1], 1 }
  0xde   :  { %581 = vsyncpa [#allocation7], 1 }

</bundles_post_ra>
